<compile_context>
chip_gen: v5e
topology: v5e:2x2
jax: 0.10.0
libtpu: 0.0.40
codegen_flags: <defaults>
</compile_context>

<pallas_src>
import jax
import jax.numpy as jnp
from jax.experimental import pallas as pl
from jax.experimental.pallas import tpu as pltpu


# ----------------------------------------------------------------------------
# Parameter init mirroring Scalar.__init__(init_value); stored as 1-D f32[1].
# ----------------------------------------------------------------------------
def init_scalar_params(init_value) -> jax.Array:
    return jnp.asarray(init_value, dtype=jnp.float32).reshape(1)


# ----------------------------------------------------------------------------
# Recommended forward: zero-overhead, differentiable identity (matches torch).
# ----------------------------------------------------------------------------
def scalar_forward(constant_param: jax.Array) -> jax.Array:
    """Equivalent of Scalar.forward(): return the stored scalar parameter."""
    assert constant_param.size == 1, "Scalar param must hold exactly one value"
    return constant_param.reshape(())


# ----------------------------------------------------------------------------
# Pallas kernel shell (tests/benchmarks only — do NOT put in a training graph).
# SMEM scalar path, 1-D f32[1], no grid, no alias, zero-cost estimate.
# ----------------------------------------------------------------------------
def _scalar_kernel(const_ref, out_ref):
    # Single scalar copy on the scalar unit (SMEM sld -> SMEM sst).
    out_ref[0] = const_ref[0]


@jax.jit
def scalar_forward_pallas(constant_param: jax.Array) -> jax.Array:
    """Pallas-call version of Scalar.forward().  Not differentiable."""
    out = pl.pallas_call(
        _scalar_kernel,
        out_shape=jax.ShapeDtypeStruct((1,), jnp.float32),
        in_specs=[pl.BlockSpec(memory_space=pltpu.SMEM)],
        out_specs=pl.BlockSpec(memory_space=pltpu.SMEM),
        cost_estimate=pl.CostEstimate(flops=0, transcendentals=0,
                                      bytes_accessed=8),
    )(constant_param)
    return out.reshape(())


# ----------------------------------------------------------------------------
# Fusion pattern (the former TODO): how a consuming SAC-loss kernel should
# ingest the scalar.  log_alpha arrives as an SMEM operand; exp() is computed
# inside the kernel; no standalone scalar launch.
# ----------------------------------------------------------------------------
def _alpha_scaled_kernel(log_alpha_ref, x_ref, o_ref):
    # Splat the SMEM scalar across the tile, then exp on the vector EUP
    # (idle slot, effectively free) and scale the VMEM tile on the VPU.
    log_alpha = jnp.full(x_ref.shape, log_alpha_ref[0], dtype=jnp.float32)
    alpha = jnp.exp(log_alpha)
    o_ref[...] = (x_ref[...].astype(jnp.float32) * alpha).astype(o_ref.dtype)


@jax.jit
def alpha_scaled_pallas(log_alpha: jax.Array, x: jax.Array) -> jax.Array:
    """exp(log_alpha) * x with the scalar fused in as an SMEM operand."""
    return pl.pallas_call(
        _alpha_scaled_kernel,
        out_shape=jax.ShapeDtypeStruct(x.shape, x.dtype),
        in_specs=[
            pl.BlockSpec(memory_space=pltpu.SMEM),          # scalar in SMEM
            pl.BlockSpec(x.shape, lambda: (0, 0)),          # full tile in VMEM
        ],
        out_specs=pl.BlockSpec(x.shape, lambda: (0, 0)),
    )(log_alpha, x)


# TODO(synk): in a real SAC training step, the consumer above is the full
# actor / alpha-loss kernel; this demo only shows the SMEM-scalar + in-kernel
# exp fusion pattern.


if __name__ == "__main__":
    # Deterministic "init_value" derived from PRNGKey(0).
    key = jax.random.PRNGKey(0)
    k_init, k_x = jax.random.split(key)
    init_value = jax.random.normal(k_init, (), dtype=jnp.float32)
    params = init_scalar_params(init_value)

    # Production path: plain-JAX identity (differentiable).
    direct = jax.block_until_ready(scalar_forward(params))
    assert direct.shape == ()
    assert direct.dtype == jnp.float32
    assert bool(jnp.allclose(direct, init_value))

    # Pallas shell path (run once, block on result).
    result = jax.block_until_ready(scalar_forward_pallas(params))
    assert result.shape == ()
    assert result.dtype == jnp.float32
    assert bool(jnp.allclose(result, direct))

    # Differentiability of the production path (SAC alpha updates).
    g = jax.grad(lambda p: scalar_forward(p) * 2.0)(params)
    assert bool(jnp.allclose(g, 2.0))

    # Fused-consumer pattern: scalar in SMEM, exp computed in-kernel.
    x = jax.random.normal(k_x, (8, 128), dtype=jnp.float32)
    fused = jax.block_until_ready(alpha_scaled_pallas(params, x))
    ref = jnp.exp(direct) * x
    assert bool(jnp.allclose(fused, ref, rtol=1e-5, atol=1e-5))

    print("KERNEL_OK")
</pallas_src>

<mosaic_0001>
module attributes {stable_mosaic.version = 11 : i64} {
  func.func @_scalar_kernel(%arg0: memref<1xf32, #tpu.memory_space<smem>>, %arg1: memref<1xf32, #tpu.memory_space<smem>>) attributes {dimension_semantics = [], scalar_prefetch = 0 : i64, scratch_operands = 0 : i64, tpu.core_type = #tpu.core_type<tc>} {
    %c0 = arith.constant 0 : index
    %0 = memref.load %arg0[%c0] : memref<1xf32, #tpu.memory_space<smem>>
    %c0_0 = arith.constant 0 : index
    %1 = memref.load %arg1[%c0_0] : memref<1xf32, #tpu.memory_space<smem>>
    memref.store %0, %arg1[%c0_0] : memref<1xf32, #tpu.memory_space<smem>>
    return
  }
}

</mosaic_0001>

<bundles_post_ra>
// kernel: scalar_forward_pallas.1
= control target key start
LH: loop header
LB: loop body
LE: loop exit
PB: predicated region body
PF: predicated region fallthrough
CT: control target
= control target key end

     0   :  { %7 = vsyncpa [#allocation4], 0  ;;  %s43_s11 = smov [#allocation3]   ;;  %s60_s0 = inlined_call_operand.<no memory space> [shape: f32[1], index: 0, kind: input, shape index: {}]   ;;  %s61_s1 = inlined_call_operand.hbm [shape: f32[1], index: 1, kind: output, shape index: {}]  }
   0x1   :  { %12 = sst [smem:[#allocation3]] %s60_s0  ;;  %s18_s10 = sshll.u32 %s61_s1, 4  ;;  %s19_s10 = int_to_ptr.hbm [resolvable:$true] %s18_s10 }
   0x2   :  { %21 = dma.smem_to_hbm %s43_s11, 16, %s19_s10, [#allocation4]  }
   0x3   :  { %41 = dma.done.wait [#allocation4], 16  }
   0x4   :  { %42 = vsyncadd [#allocation4], 4294967280 }
   0x5   :  { %26 = sfence }
   0x6   :  { %27 = vsyncpa [#allocation4], 1 }

</bundles_post_ra>
